<compile_context>
chip_gen: v5e
topology: v5e:2x2
jax: 0.10.0
libtpu: 0.0.40
codegen_flags: <defaults>
</compile_context>

<pallas_src>
import functools

import jax
import jax.numpy as jnp
from jax import lax
from jax.experimental import pallas as pl
from jax.experimental.pallas import tpu as pltpu

BN_EPS = 1e-5


def _relu(h):
    return jnp.maximum(h, 0.0)


def _augmented_block_kernel(x_ref, aug_ref, w_ref, bgb_ref, o_ref, *,
                            n_valid: int, n_pad: int, act):
    # Two K=C_in MXU pushes with f32 accumulation (operands may be bf16).
    h = jnp.dot(x_ref[...], w_ref[0], preferred_element_type=jnp.float32)
    h = h + jnp.dot(aug_ref[...], w_ref[1], preferred_element_type=jnp.float32)

    bgb = bgb_ref[...]                       # (3, TC) f32: [bx+ba, gamma, beta]
    h = h + bgb[0:1, :]
    h = act(h)

    # BatchNorm1d, training mode: per-feature batch mean / biased variance.
    # Padded rows (if any) are masked out of the statistics.
    if n_pad != n_valid:
        valid = lax.broadcasted_iota(jnp.int32, (n_pad, 1), 0) < n_valid
        h_stat = jnp.where(valid, h, 0.0)
    else:
        valid = None
        h_stat = h

    inv_n = 1.0 / float(n_valid)
    mean = jnp.sum(h_stat, axis=0, keepdims=True) * inv_n        # (1, TC)
    d = h - mean
    dsq = d * d
    if valid is not None:
        dsq = jnp.where(valid, dsq, 0.0)
    var = jnp.sum(dsq, axis=0, keepdims=True) * inv_n            # (1, TC)

    # Epilogue as a single broadcasted FMA on h: o = h*scale + shift.
    scale = lax.rsqrt(var + BN_EPS) * bgb[1:2, :]                # (1, TC)
    shift = bgb[2:3, :] - mean * scale                           # (1, TC)
    o_ref[...] = (h * scale + shift).astype(o_ref.dtype)


def _choose_block_c(c_out: int, max_block_c: int = 256) -> int:
    """Feature-tile width. Full c_out when it is not a 128-multiple (no feature
    padding, no post-slice); otherwise the widest 128-multiple <= max_block_c
    that divides c_out while still leaving >= 2 tiles (megacore sharding)."""
    if c_out % 128 != 0:
        return c_out
    bc = 128
    while (bc * 2 <= max_block_c and c_out % (bc * 2) == 0
           and c_out // (bc * 2) >= 2):
        bc *= 2
    return bc


def prepare_params(wx, bx, wa, ba, gamma, beta, *, max_block_c=256,
                   mxu_dtype=jnp.float32):
    """One-time, call-invariant parameter preparation (do at init, not per call).

    wx, wa: [C_in, C_out]; bx, ba, gamma, beta: [C_out].
    """
    c_in, c_out = wx.shape
    block_c = _choose_block_c(c_out, max_block_c)
    w = jnp.stack([wx, wa], axis=0).astype(mxu_dtype)            # (2, C_in, C_out)
    bgb = jnp.stack([(bx + ba).astype(jnp.float32),              # fused bias
                     gamma.astype(jnp.float32),
                     beta.astype(jnp.float32)], axis=0)          # (3, C_out)
    return dict(w=w, bgb=bgb, c_in=c_in, c_out=c_out,
                block_c=block_c, mxu_dtype=mxu_dtype)


def augmented_block_apply(x, aug, params, *, act=_relu, out_dtype=jnp.float32):
    """x, aug: [N, C_in]; params: from prepare_params(). Returns [N, C_out]."""
    n, c_in = x.shape
    assert c_in == params["c_in"]
    c_out, block_c = params["c_out"], params["block_c"]
    mxu_dtype = params["mxu_dtype"]
    w, bgb = params["w"], params["bgb"]

    # Rows -> multiple of 8 (f32) / 16 (bf16 sublane packing).
    row_mult = 16 if mxu_dtype == jnp.bfloat16 else 8
    n_pad = ((n + row_mult - 1) // row_mult) * row_mult

    x_in = x.astype(mxu_dtype)
    aug_in = aug.astype(mxu_dtype)
    if n_pad != n:
        x_in = jnp.pad(x_in, ((0, n_pad - n), (0, 0)))
        aug_in = jnp.pad(aug_in, ((0, n_pad - n), (0, 0)))

    num_tiles = c_out // block_c
    kernel = functools.partial(_augmented_block_kernel,
                               n_valid=n, n_pad=n_pad, act=act)

    a_item = jnp.dtype(mxu_dtype).itemsize
    cost = pl.CostEstimate(
        flops=4 * n_pad * c_in * c_out + 10 * n_pad * c_out,
        transcendentals=c_out,
        bytes_accessed=(2 * n_pad * c_in * a_item            # x + aug (resident)
                        + 2 * c_in * c_out * a_item          # stacked weights
                        + 3 * c_out * 4                      # packed bias/gamma/beta
                        + n_pad * c_out * jnp.dtype(out_dtype).itemsize),
    )

    out = pl.pallas_call(
        kernel,
        out_shape=jax.ShapeDtypeStruct((n_pad, c_out), out_dtype),
        grid=(num_tiles,),
        in_specs=[
            pl.BlockSpec((n_pad, c_in), lambda j: (0, 0)),          # x   (resident)
            pl.BlockSpec((n_pad, c_in), lambda j: (0, 0)),          # aug (resident)
            pl.BlockSpec((2, c_in, block_c), lambda j: (0, 0, j)),  # stacked Wx/Wa tile
            pl.BlockSpec((3, block_c), lambda j: (0, j)),           # packed bias/gamma/beta
        ],
        out_specs=pl.BlockSpec((n_pad, block_c), lambda j: (0, j)),
        compiler_params=pltpu.CompilerParams(
            dimension_semantics=("parallel",)),
        cost_estimate=cost,
    )(x_in, aug_in, w, bgb)

    return out if n_pad == n else out[:n]


def reference(x, aug, wx, bx, wa, ba, gamma, beta):
    h = x @ wx + bx
    h = h + aug @ wa + ba
    h = jnp.maximum(h, 0.0)
    mean = jnp.mean(h, axis=0, keepdims=True)
    var = jnp.mean((h - mean) ** 2, axis=0, keepdims=True)
    return (h - mean) / jnp.sqrt(var + BN_EPS) * gamma + beta


if __name__ == "__main__":
    key = jax.random.PRNGKey(0)
    N, C_IN, C_OUT = 8, 16, 32

    ks = jax.random.split(key, 6)
    x = jax.random.normal(ks[0], (N, C_IN), dtype=jnp.float32)
    aug = jax.random.normal(ks[1], (N, C_IN), dtype=jnp.float32)

    # Deterministic parameter init (PyTorch-style uniform bounds for Linear).
    bound = 1.0 / jnp.sqrt(jnp.float32(C_IN))
    wx = jax.random.uniform(ks[2], (C_IN, C_OUT), minval=-bound, maxval=bound)
    bx = jax.random.uniform(ks[3], (C_OUT,), minval=-bound, maxval=bound)
    wa = jax.random.uniform(ks[4], (C_IN, C_OUT), minval=-bound, maxval=bound)
    ba = jax.random.uniform(ks[5], (C_OUT,), minval=-bound, maxval=bound)
    gamma = jnp.ones((C_OUT,), jnp.float32)   # BatchNorm1d default affine init
    beta = jnp.zeros((C_OUT,), jnp.float32)

    ref = reference(x, aug, wx, bx, wa, ba, gamma, beta)

    # --- f32 MXU path: exact vs the f32 reference ---------------------------
    params_f32 = prepare_params(wx, bx, wa, ba, gamma, beta)
    out = jax.block_until_ready(augmented_block_apply(x, aug, params_f32))
    assert out.shape == (N, C_OUT)
    assert jnp.max(jnp.abs(out - ref)) < 1e-4, "f32 path mismatch vs reference"

    # --- bf16 MXU-operand path (v5e/v6e/v7x throughput option) --------------
    # Compared against a reference that sees the same bf16-rounded operands,
    # so only the kernel's own math (f32 accumulation + f32 BN) is tested.
    params_bf16 = prepare_params(wx, bx, wa, ba, gamma, beta,
                                 mxu_dtype=jnp.bfloat16)
    out_bf16 = jax.block_until_ready(augmented_block_apply(x, aug, params_bf16))
    ref_bf16 = reference(
        x.astype(jnp.bfloat16).astype(jnp.float32),
        aug.astype(jnp.bfloat16).astype(jnp.float32),
        wx.astype(jnp.bfloat16).astype(jnp.float32), bx,
        wa.astype(jnp.bfloat16).astype(jnp.float32), ba, gamma, beta)
    assert out_bf16.shape == (N, C_OUT)
    assert jnp.max(jnp.abs(out_bf16 - ref_bf16)) < 1e-3, "bf16 path mismatch"

    print("KERNEL_OK")
</pallas_src>

<mosaic_0001>
module attributes {stable_mosaic.version = 11 : i64} {
  func.func @_augmented_block_kernel(%arg0: i32, %arg1: memref<8x16xf32, #tpu.memory_space<vmem>>, %arg2: memref<8x16xf32, #tpu.memory_space<vmem>>, %arg3: memref<2x16x32xf32, #tpu.memory_space<vmem>>, %arg4: memref<3x32xf32, #tpu.memory_space<vmem>>, %arg5: memref<8x32xf32, #tpu.memory_space<vmem>>) attributes {dimension_semantics = [#tpu.dimension_semantics<parallel>], iteration_bounds = array<i64: 1>, scalar_prefetch = 0 : i64, scratch_operands = 0 : i64, tpu.core_type = #tpu.core_type<tc>, window_params = [{pipeline_mode = #tpu.pipeline_mode<synchronous>, transform_indices = @transform_0, window_bounds = array<i64: 8, 16>}, {pipeline_mode = #tpu.pipeline_mode<synchronous>, transform_indices = @transform_1, window_bounds = array<i64: 8, 16>}, {transform_indices = @transform_2, window_bounds = array<i64: 2, 16, 32>}, {transform_indices = @transform_3, window_bounds = array<i64: 3, 32>}, {transform_indices = @transform_4, window_bounds = array<i64: 8, 32>}]} {
    %c0 = arith.constant 0 : index
    %c0_0 = arith.constant 0 : index
    %0 = vector.load %arg1[%c0, %c0_0] : memref<8x16xf32, #tpu.memory_space<vmem>>, vector<8x16xf32>
    %c0_1 = arith.constant 0 : index
    %c0_2 = arith.constant 0 : index
    %c0_3 = arith.constant 0 : index
    %1 = vector.load %arg3[%c0_1, %c0_2, %c0_3] : memref<2x16x32xf32, #tpu.memory_space<vmem>>, vector<1x16x32xf32>
    %2 = vector.shape_cast %1 : vector<1x16x32xf32> to vector<16x32xf32>
    %cst = arith.constant dense<0.000000e+00> : vector<8x32xf32>
    %3 = tpu.matmul %0, %2, %cst {dimension_numbers = #tpu.dot_dimension_numbers<[1], [0], [0], [1], [0, 0, 1, 1], [], []>} : vector<8x16xf32>, vector<16x32xf32>, vector<8x32xf32> -> vector<8x32xf32>
    %c0_4 = arith.constant 0 : index
    %c0_5 = arith.constant 0 : index
    %4 = vector.load %arg2[%c0_4, %c0_5] : memref<8x16xf32, #tpu.memory_space<vmem>>, vector<8x16xf32>
    %c1 = arith.constant 1 : index
    %c0_6 = arith.constant 0 : index
    %c0_7 = arith.constant 0 : index
    %5 = vector.load %arg3[%c1, %c0_6, %c0_7] : memref<2x16x32xf32, #tpu.memory_space<vmem>>, vector<1x16x32xf32>
    %6 = vector.shape_cast %5 : vector<1x16x32xf32> to vector<16x32xf32>
    %cst_8 = arith.constant dense<0.000000e+00> : vector<8x32xf32>
    %7 = tpu.matmul %4, %6, %cst_8 {dimension_numbers = #tpu.dot_dimension_numbers<[1], [0], [0], [1], [0, 0, 1, 1], [], []>} : vector<8x16xf32>, vector<16x32xf32>, vector<8x32xf32> -> vector<8x32xf32>
    %8 = arith.addf %3, %7 : vector<8x32xf32>
    %c0_9 = arith.constant 0 : index
    %c0_10 = arith.constant 0 : index
    %9 = vector.load %arg4[%c0_9, %c0_10] : memref<3x32xf32, #tpu.memory_space<vmem>>, vector<3x32xf32>
    %10 = vector.extract_strided_slice %9 {offsets = [0, 0], sizes = [1, 32], strides = [1, 1]} : vector<3x32xf32> to vector<1x32xf32>
    %11 = vector.broadcast %10 : vector<1x32xf32> to vector<8x32xf32>
    %12 = arith.addf %8, %11 : vector<8x32xf32>
    %cst_11 = arith.constant 0.000000e+00 : f32
    %13 = vector.broadcast %cst_11 : f32 to vector<8x32xf32>
    %14 = arith.maximumf %12, %13 : vector<8x32xf32>
    %cst_12 = arith.constant dense<0.000000e+00> : vector<32xf32>
    %15 = vector.multi_reduction <add>, %14, %cst_12 [0] : vector<8x32xf32> to vector<32xf32>
    %16 = vector.shape_cast %15 : vector<32xf32> to vector<1x32xf32>
    %cst_13 = arith.constant 1.250000e-01 : f32
    %17 = vector.broadcast %cst_13 : f32 to vector<1x32xf32>
    %18 = arith.mulf %16, %17 : vector<1x32xf32>
    %19 = vector.broadcast %18 : vector<1x32xf32> to vector<8x32xf32>
    %20 = arith.subf %14, %19 : vector<8x32xf32>
    %21 = arith.mulf %20, %20 : vector<8x32xf32>
    %cst_14 = arith.constant dense<0.000000e+00> : vector<32xf32>
    %22 = vector.multi_reduction <add>, %21, %cst_14 [0] : vector<8x32xf32> to vector<32xf32>
    %23 = vector.shape_cast %22 : vector<32xf32> to vector<1x32xf32>
    %cst_15 = arith.constant 1.250000e-01 : f32
    %24 = vector.broadcast %cst_15 : f32 to vector<1x32xf32>
    %25 = arith.mulf %23, %24 : vector<1x32xf32>
    %cst_16 = arith.constant 9.99999974E-6 : f32
    %26 = vector.broadcast %cst_16 : f32 to vector<1x32xf32>
    %27 = arith.addf %25, %26 : vector<1x32xf32>
    %28 = math.rsqrt %27 : vector<1x32xf32>
    %29 = vector.extract_strided_slice %9 {offsets = [1, 0], sizes = [1, 32], strides = [1, 1]} : vector<3x32xf32> to vector<1x32xf32>
    %30 = arith.mulf %28, %29 : vector<1x32xf32>
    %31 = vector.extract_strided_slice %9 {offsets = [2, 0], sizes = [1, 32], strides = [1, 1]} : vector<3x32xf32> to vector<1x32xf32>
    %32 = arith.mulf %18, %30 : vector<1x32xf32>
    %33 = arith.subf %31, %32 : vector<1x32xf32>
    %34 = vector.broadcast %30 : vector<1x32xf32> to vector<8x32xf32>
    %35 = arith.mulf %14, %34 : vector<8x32xf32>
    %36 = vector.broadcast %33 : vector<1x32xf32> to vector<8x32xf32>
    %37 = arith.addf %35, %36 : vector<8x32xf32>
    %c0_17 = arith.constant 0 : index
    %c0_18 = arith.constant 0 : index
    %38 = vector.load %arg5[%c0_17, %c0_18] : memref<8x32xf32, #tpu.memory_space<vmem>>, vector<8x32xf32>
    tpu.vector_store %arg5[%c0_17, %c0_18], %37 {strides = array<i32>} : memref<8x32xf32, #tpu.memory_space<vmem>>, vector<8x32xf32>,
    return
  }
  func.func @transform_0(%arg0: i32) -> (i32, i32) {
    %c0_i32 = arith.constant 0 : i32
    %c0_i32_0 = arith.constant 0 : i32
    %c0_i32_1 = arith.constant 0 : i32
    return %c0_i32, %c0_i32_0 : i32, i32
  }
  func.func @transform_1(%arg0: i32) -> (i32, i32) {
    %c0_i32 = arith.constant 0 : i32
    %c0_i32_0 = arith.constant 0 : i32
    %c0_i32_1 = arith.constant 0 : i32
    return %c0_i32, %c0_i32_0 : i32, i32
  }
  func.func @transform_2(%arg0: i32) -> (i32, i32, i32) {
    %c0_i32 = arith.constant 0 : i32
    %c0_i32_0 = arith.constant 0 : i32
    %c0_i32_1 = arith.constant 0 : i32
    return %c0_i32, %c0_i32_0, %arg0 : i32, i32, i32
  }
  func.func @transform_3(%arg0: i32) -> (i32, i32) {
    %c0_i32 = arith.constant 0 : i32
    %c0_i32_0 = arith.constant 0 : i32
    return %c0_i32, %arg0 : i32, i32
  }
  func.func @transform_4(%arg0: i32) -> (i32, i32) {
    %c0_i32 = arith.constant 0 : i32
    %c0_i32_0 = arith.constant 0 : i32
    return %c0_i32, %arg0 : i32, i32
  }
}

</mosaic_0001>

<bundles_post_ra>
// kernel: tpu_custom_call.1
= control target key start
LH: loop header
LB: loop body
LE: loop exit
PB: predicated region body
PF: predicated region fallthrough
CT: control target
= control target key end

     0   :  { %9 = vsyncpa [#allocation3], 0  ;;  %s382_s0 = inlined_call_operand.hbm [shape: f32[8,16], index: 0, kind: input, shape index: {}]   ;;  %s383_s1 = inlined_call_operand.hbm [shape: f32[8,16], index: 1, kind: input, shape index: {}]   ;;  %s384_s2 = inlined_call_operand.hbm [shape: f32[2,16,32], index: 2, kind: input, shape index: {}]   ;;  %s385_s3 = inlined_call_operand.hbm [shape: f32[3,32], index: 3, kind: input, shape index: {}]   ;;  %s386_s4 = inlined_call_operand.hbm [shape: f32[8,32], index: 4, kind: output, shape index: {}]  }
   0x1   :  { %10 = vsyncpa [#allocation6], 0 }
   0x2   :  { %11 = vsyncpa [#allocation9], 0  ;;  %s29_s17 = sshll.u32 %s383_s1, 4  ;;  %s30_s17 = int_to_ptr.hbm [resolvable:$true] %s29_s17 }
   0x3   :  { %12 = vsyncpa [#allocation4], 0  ;;  %s332_s18 = smov [#allocation5]   ;;  %s18_s22 = sshll.u32 %s382_s0, 4  ;;  %s19_s22 = int_to_ptr.hbm [resolvable:$true] %s18_s22 }
   0x4   :  { %s31_s19 = sshll.u32 %s332_s18, 4  ;;  %s333_s23 = smov [#allocation2]   ;;  %s32_s19 = int_to_ptr.vmem [resolvable:$true] %s31_s19 }
   0x5   :  { %34 = dma.hbm_to_vmem [thread:$0]  %s30_s17, 128, %s32_s19, [#allocation6]  }
   0x6   :  { %s20_s24 = sshll.u32 %s333_s23, 4  ;;  %s39_s27 = sshll.u32 %s384_s2, 4  ;;  %s21_s24 = int_to_ptr.vmem [resolvable:$true] %s20_s24  ;;  %s40_s27 = int_to_ptr.hbm [resolvable:$true] %s39_s27 }
   0x7   :  { %23 = dma.hbm_to_vmem [thread:$0]  %s19_s22, 128, %s21_s24, [#allocation3]  }
   0x8   :  { %s334_s1 = smov [#allocation7]   ;;  %s53_s5 = sshll.u32 %s385_s3, 4  ;;  %s54_s5 = int_to_ptr.hbm [resolvable:$true] %s53_s5 }
   0x9   :  { %s41_s28 = sshll.u32 %s334_s1, 4  ;;  %s335_s6 = smov 128   ;;  %s42_s28 = int_to_ptr.vmem [resolvable:$true] %s41_s28 }
   0xa   :  { %s336_s0 = smov 8   ;;  %s337_s7 = smov [#allocation8]  }
   0xb   :  { %47 = dma.hbm_to_vmem [thread:$0]  %s40_s27, 512, %s42_s28, [#allocation6], %s335_s6, %s335_s6, %s336_s0  }
   0xc   :  { %s55_s8 = sshll.u32 %s337_s7, 4  ;;  %s56_s8 = int_to_ptr.vmem [resolvable:$true] %s55_s8 }
   0xd   :  { %58 = dma.hbm_to_vmem [thread:$0]  %s54_s5, 64, %s56_s8, [#allocation9]  }
   0xe   :  { %324 = dma.done.wait [#allocation3], 128  }
   0xf   :  { %325 = vsyncadd [#allocation3], 4294967168 }
  0x10   :  { %326 = dma.done.wait [#allocation6], 640  }
  0x11   :  { %327 = vsyncadd [#allocation6], 4294966656 }
  0x12   :  { %328 = dma.done.wait [#allocation9], 64  }
  0x13   :  { %329 = vsyncadd [#allocation9], 4294967232  ;;  %v81_v0 = vld [vmem:[#allocation7 + $0x18] sm:$0xff]  ;;  %v77_v1 = vld [vmem:[#allocation7 + $0x8] sm:$0xff]  ;;  %vm82_vm0 = vcmask 130048   ;;  %vm133_vm1 = vcmask 261120  }
  0x14   :  { %v80_v2 = vld [vmem:[#allocation7 + $0x10] sm:$0xff]  ;;  %100 = vmatpush.msra.mxu0 %v81_v0  ;;  %123 = vmatpush.msra.mxu1 %v77_v1  ;;  %v76_v3 = vld [vmem:[#allocation7] sm:$0xff]  ;;  %v78_v4 = vld [vmem:[#allocation5] sm:$0xff]  ;;  %s338_s2 = smov [#allocation10]   ;;  %s181_s11 = sshll.u32 %s386_s4, 4  ;;  %s182_s11 = int_to_ptr.hbm [resolvable:$true] %s181_s11 }
  0x15   :  { %v75_v5 = vld [vmem:[#allocation2] sm:$0xff]  ;;  %v129_v6 = vld [vmem:[#allocation8] sm:$0x7]  ;;  %s179_s3 = sshll.u32 %s338_s2, 4  ;;  %s180_s3 = int_to_ptr.vmem [resolvable:$true] %s179_s3 }
  0x16   :  { %101 = vmatpush.msra.mxu0 %v80_v2  ;;  %124 = vmatpush.msra.mxu1 %v76_v3  ;;  %v130_v7 = vperm.slane %v129_v6, 0 }
  0x17   :  { %193 = vmatmul.msk.f32.vlgmr.msra.gmra.mxu0 %vm82_vm0, %v78_v4  ;;  %194 = vmatmul.msk.f32.vlgmr.msra.gmra.mxu1 %vm82_vm0, %v75_v5 }
  0x94   :  { %v103_v8 = vpop.f32.mrf.mxu0  ;;  %v126_v9 = vpop.f32.mrf.mxu1 }
  0x95   :  { %v127_v10 = vadd.f32 %v126_v9, %v103_v8 }
  0x97   :  { %v131_v11 = vadd.f32 %v130_v7, %v127_v10 }
  0x99   :  { %v132_v12 = vmax.f32 %v131_v11, 0.0 }
  0x9b   :  { %v134_v13 = vsel %vm133_vm1, %v132_v12, 0.0 }
  0x9c   :  { %v135_v14 = vrot.slane %v134_v13, 4 }
  0x9e   :  { %v136_v15 = vadd.f32 %v135_v14, %v134_v13 }
  0xa0   :  { %v137_v16 = vrot.slane %v136_v15, 2 }
  0xa2   :  { %v138_v17 = vadd.f32 %v137_v16, %v136_v15 }
  0xa4   :  { %v139_v18 = vrot.slane %v138_v17, 1 }
  0xa6   :  { %v140_v19 = vadd.f32 %v139_v18, %v138_v17 }
  0xa8   :  { %v141_v20 = vmul.f32 0.125, %v140_v19 }
  0xaa   :  { %v142_v21 = vsub.f32 %v132_v12, %v141_v20 }
  0xac   :  { %v143_v22 = vmul.f32 %v142_v21, %v142_v21 }
  0xae   :  { %v144_v23 = vsel %vm133_vm1, %v143_v22, 0.0 }
  0xaf   :  { %v145_v24 = vrot.slane %v144_v23, 4 }
  0xb1   :  { %v146_v25 = vadd.f32 %v145_v24, %v144_v23 }
  0xb3   :  { %v147_v26 = vrot.slane %v146_v25, 2 }
  0xb5   :  { %v148_v27 = vadd.f32 %v147_v26, %v146_v25 }
  0xb7   :  { %v149_v28 = vrot.slane %v148_v27, 1 }
  0xb9   :  { %v150_v29 = vadd.f32 %v149_v28, %v148_v27 }
  0xbb   :  { %v151_v30 = vmul.f32 0.125, %v150_v29 }
  0xbd   :  { %v152_v31 = vadd.f32 1e-05, %v151_v30 }
  0xbf   :  { %202 = vrsqrt.f32 %v152_v31  ;;  %vm159_vm3 = vweird.f32 %v152_v31 }
  0xc5   :  { %v203_v32 = vpop.eup %202 }
  0xc6   :  { %v154_v33 = vmul.f32 %v203_v32, %v152_v31  ;;  %vm160_vm2 = vweird.f32 %v203_v32 }
  0xc7   :  { %vm161_vm4 = vmor %vm159_vm3, %vm160_vm2 }
  0xc8   :  { %v155_v34 = vmul.f32 %v203_v32, %v154_v33 }
  0xca   :  { %v156_v35 = vmul.f32 0.5, %v155_v34 }
  0xcc   :  { %v157_v36 = vsub.f32 1.5, %v156_v35 }
  0xce   :  { %v158_v37 = vmul.f32 %v203_v32, %v157_v36 }
  0xd0   :  { %v162_v38 = vsel %vm161_vm4, %v203_v32, %v158_v37 }
  0xd1   :  { %v163_v39 = vmul.f32 %v162_v38, %v129_v6 }
  0xd3   :  { %v164_v40 = vmul.f32 %v163_v39, %v141_v20  ;;  %v169_v42 = vperm.slane %v163_v39, 1 }
  0xd5   :  { %v166_v41 = vrot.slane %v164_v40, 7  ;;  %v170_v44 = vmul.f32 %v169_v42, %v132_v12 }
  0xd7   :  { %v168_v43 = vsub.f32 %v129_v6, %v166_v41 }
  0xd9   :  { %v171_v45 = vperm.slane %v168_v43, 2 }
  0xdb   :  { %v172_v46 = vadd.f32 %v171_v45, %v170_v44 }
  0xdd   :  { %173 = vst.msk [vmem:[#allocation10] sm:$0xff] %vm133_vm1, %v172_v46 }
  0xde   :  { %184 = dma.vmem_to_hbm [thread:$0]  %s180_s3, 128, %s182_s11, [#allocation4]  }
  0xdf   :  { %330 = dma.done.wait [#allocation4], 128  }
  0xe0   :  { %331 = vsyncadd [#allocation4], 4294967168 }
  0xe1   :  { %189 = vsyncpa [#allocation3], 1 }
  0xe2   :  { %190 = vsyncpa [#allocation6], 1 }
  0xe3   :  { %191 = vsyncpa [#allocation9], 1 }
  0xe4   :  { %192 = vsyncpa [#allocation4], 1 }

</bundles_post_ra>
